<compile_context>
chip_gen: v6e
topology: v6e:2x2x1
jax: 0.10.0
libtpu: 0.0.40
codegen_flags: <defaults>
</compile_context>

<pallas_src>
import jax
import jax.numpy as jnp
from jax.experimental import pallas as pl
from jax.experimental.pallas import tpu as pltpu

EPS = 1e-5      # PyTorch GroupNorm default eps
GROUPS = 32     # both GroupNorms use 32 groups


# ---------------------------------------------------------------------------
# Fused kernel: SiLU(GroupNorm32(x)) -> 3x3 conv(pad=1) [+ time bias] [+ residual]
# ---------------------------------------------------------------------------
def _make_fused_kernel(H, W, Cg, add_time, res_mode):
    HW = H * W
    cnt = float(HW * (Cg // GROUPS))

    def kernel(*refs):
        it = iter(refs)
        x_ref = next(it)                                    # (1, H, W, Cg)  f32
        g_ref = next(it)                                    # (1, Cg)        GN gamma
        b_ref = next(it)                                    # (1, Cg)        GN beta
        a_ref = next(it)                                    # (Cg, G)        channel->group one-hot
        at_ref = next(it)                                   # (G, Cg)
        w_ref = next(it)                                    # (3, 3, Cg, tc) bf16 conv weight tile
        cb_ref = next(it)                                   # (1, tc)        conv bias tile
        t_ref = next(it) if add_time else None              # (1, tc)        time bias tile
        r_ref = next(it) if res_mode != "none" else None    # residual input
        rw_ref = next(it) if res_mode == "proj" else None   # (Cres, tc)     bf16 1x1 weight tile
        rb_ref = next(it) if res_mode == "proj" else None   # (1, tc)
        o_ref = next(it)                                    # (1, H, W, tc)  f32
        hpad_ref = next(it)                                 # (H+2, W+2, Cg) f32 VMEM scratch

        # ---- GroupNorm(32): two-pass (mean-subtracted) stats on the MXU, f32 ----
        x = x_ref[0].reshape(HW, Cg)
        ones_row = jnp.ones((1, HW), jnp.float32)
        a = a_ref[...]
        at = at_ref[...]
        s_c = jnp.dot(ones_row, x, preferred_element_type=jnp.float32)          # (1, Cg)
        mean_g = jnp.dot(s_c, a, preferred_element_type=jnp.float32) / cnt      # (1, G)
        mean_c = jnp.dot(mean_g, at, preferred_element_type=jnp.float32)        # (1, Cg)
        d = x - mean_c
        ss_c = jnp.dot(ones_row, d * d, preferred_element_type=jnp.float32)     # (1, Cg)
        var_g = jnp.dot(ss_c, a, preferred_element_type=jnp.float32) / cnt      # (1, G) >= 0
        inv_c = jnp.dot(jax.lax.rsqrt(var_g + EPS), at,
                        preferred_element_type=jnp.float32)                     # (1, Cg)
        y = d * inv_c * g_ref[...] + b_ref[...]
        y = y * jax.nn.sigmoid(y)                                               # SiLU

        # ---- zero-padded activation kept in VMEM (no jnp.pad, no HBM round trip) ----
        hpad_ref[...] = jnp.zeros_like(hpad_ref)
        hpad_ref[1:H + 1, 1:W + 1, :] = y.reshape(H, W, Cg)

        # ---- 3x3 conv: 3 row-block materializations, 9 MXU matmuls (bf16 in, f32 acc) ----
        tc = o_ref.shape[3]
        acc = jnp.zeros((H, W, tc), jnp.float32)
        for ky in range(3):
            rowblk = hpad_ref[ky:ky + H].reshape(H * (W + 2), Cg).astype(jnp.bfloat16)
            for kx in range(3):
                z = jnp.dot(rowblk, w_ref[ky, kx],
                            preferred_element_type=jnp.float32)                 # (H*(W+2), tc)
                acc = acc + z.reshape(H, W + 2, tc)[:, kx:kx + W, :]
        acc = acc.reshape(HW, tc) + cb_ref[...]

        if add_time:
            acc = acc + t_ref[...]
        if res_mode == "identity":
            acc = acc + r_ref[0].reshape(HW, tc)
        elif res_mode == "proj":
            cres = r_ref.shape[3]
            acc = acc + jnp.dot(r_ref[0].reshape(HW, cres).astype(jnp.bfloat16),
                                rw_ref[...], preferred_element_type=jnp.float32)
            acc = acc + rb_ref[...]
        o_ref[0] = acc.reshape(H, W, tc)

    return kernel


def fused_gn_silu_conv3x3(x, gamma, beta, w, cb, *, time_bias=None,
                          res=None, res_w=None, res_b=None):
    """x: (N,H,W,Cg) NHWC f32.  w: (3,3,Cg,Cout).  Returns conv(SiLU(GN(x))) + extras."""
    N, H, W, Cg = x.shape
    Cout = w.shape[-1]
    G = GROUPS
    assert Cg % G == 0
    tc = 128 if Cout % 128 == 0 else Cout                  # Cout tile (weights streamed per tile)

    onehot = (jnp.arange(Cg)[:, None] // (Cg // G)
              == jnp.arange(G)[None, :]).astype(jnp.float32)

    inputs = [x, gamma.reshape(1, Cg), beta.reshape(1, Cg), onehot, onehot.T,
              w.astype(jnp.bfloat16), cb.reshape(1, Cout)]
    in_specs = [
        pl.BlockSpec((1, H, W, Cg), lambda n, j: (n, 0, 0, 0)),
        pl.BlockSpec((1, Cg), lambda n, j: (0, 0)),
        pl.BlockSpec((1, Cg), lambda n, j: (0, 0)),
        pl.BlockSpec((Cg, G), lambda n, j: (0, 0)),
        pl.BlockSpec((G, Cg), lambda n, j: (0, 0)),
        pl.BlockSpec((3, 3, Cg, tc), lambda n, j: (0, 0, 0, j)),
        pl.BlockSpec((1, tc), lambda n, j: (0, j)),
    ]
    add_time = time_bias is not None
    if add_time:
        inputs.append(time_bias)                                            # (N, Cout)
        in_specs.append(pl.BlockSpec((1, tc), lambda n, j: (n, j)))
    if res is None:
        res_mode = "none"
    elif res_w is None:
        res_mode = "identity"
        inputs.append(res)                                                  # (N, H, W, Cout)
        in_specs.append(pl.BlockSpec((1, H, W, tc), lambda n, j: (n, 0, 0, j)))
    else:
        res_mode = "proj"
        cres = res.shape[-1]
        inputs += [res, res_w.astype(jnp.bfloat16), res_b.reshape(1, Cout)]
        in_specs += [pl.BlockSpec((1, H, W, cres), lambda n, j: (n, 0, 0, 0)),
                     pl.BlockSpec((cres, tc), lambda n, j: (0, j)),
                     pl.BlockSpec((1, tc), lambda n, j: (0, j))]

    kernel = _make_fused_kernel(H, W, Cg, add_time, res_mode)
    return pl.pallas_call(
        kernel,
        out_shape=jax.ShapeDtypeStruct((N, H, W, Cout), jnp.float32),
        grid=(N, Cout // tc),
        in_specs=in_specs,
        out_specs=pl.BlockSpec((1, H, W, tc), lambda n, j: (n, 0, 0, j)),
        scratch_shapes=[pltpu.VMEM((H + 2, W + 2, Cg), jnp.float32)],
        compiler_params=pltpu.CompilerParams(
            dimension_semantics=("parallel", "parallel")),
    )(*inputs)


# ---------------------------------------------------------------------------
# Time embedding: SiLU(time) @ W + b   (tiled over Cout)
# ---------------------------------------------------------------------------
def _silu_linear_kernel(t_ref, w_ref, b_ref, o_ref):
    t = t_ref[...]
    t = t * jax.nn.sigmoid(t)
    o_ref[...] = jnp.dot(t.astype(jnp.bfloat16), w_ref[...],
                         preferred_element_type=jnp.float32) + b_ref[...]


def silu_linear(t, w, b):
    N, NT = t.shape
    Cout = w.shape[1]
    tc = 128 if Cout % 128 == 0 else Cout
    return pl.pallas_call(
        _silu_linear_kernel,
        out_shape=jax.ShapeDtypeStruct((N, Cout), jnp.float32),
        grid=(Cout // tc,),
        in_specs=[pl.BlockSpec((N, NT), lambda j: (0, 0)),
                  pl.BlockSpec((NT, tc), lambda j: (0, j)),
                  pl.BlockSpec((1, tc), lambda j: (0, j))],
        out_specs=pl.BlockSpec((N, tc), lambda j: (0, j)),
        compiler_params=pltpu.CompilerParams(dimension_semantics=("parallel",)),
    )(t, w.astype(jnp.bfloat16), b.reshape(1, Cout))


# ---------------------------------------------------------------------------
# Full residual block (wrapper: NCHW in/out like the PyTorch module)
# ---------------------------------------------------------------------------
def unet_residual_block(feature_nchw, time, params, in_channels, out_channels):
    x = jnp.transpose(feature_nchw, (0, 2, 3, 1))                 # NCHW -> NHWC
    t = silu_linear(time, params["lin_w"], params["lin_b"])       # (N, Cout)
    # kernel A: SiLU(GN1(x)) -> conv_feature -> + bias -> + time broadcast
    f = fused_gn_silu_conv3x3(x, params["gn1_gamma"], params["gn1_beta"],
                              params["conv1_w"], params["conv1_b"], time_bias=t)
    # kernel B: SiLU(GN2(merged)) -> conv_merged -> + bias -> + residual
    if in_channels == out_channels:
        out = fused_gn_silu_conv3x3(f, params["gn2_gamma"], params["gn2_beta"],
                                    params["conv2_w"], params["conv2_b"], res=x)
    else:
        out = fused_gn_silu_conv3x3(f, params["gn2_gamma"], params["gn2_beta"],
                                    params["conv2_w"], params["conv2_b"],
                                    res=x, res_w=params["res_w"], res_b=params["res_b"])
    return jnp.transpose(out, (0, 3, 1, 2))                       # NHWC -> NCHW


# ---------------------------------------------------------------------------
# Pure-JAX reference (f32) for validation
# ---------------------------------------------------------------------------
def _gn_ref(v, gamma, beta):
    N, H, W, C = v.shape
    vg = v.reshape(N, H * W, GROUPS, C // GROUPS)
    mean = vg.mean(axis=(1, 3), keepdims=True)
    var = jnp.mean((vg - mean) ** 2, axis=(1, 3), keepdims=True)
    vg = (vg - mean) * jax.lax.rsqrt(var + EPS)
    return vg.reshape(N, H, W, C) * gamma + beta


def _reference_block(feature_nchw, time, params, in_channels, out_channels):
    silu = lambda v: v * jax.nn.sigmoid(v)
    x = jnp.transpose(feature_nchw, (0, 2, 3, 1))
    h = silu(_gn_ref(x, params["gn1_gamma"], params["gn1_beta"]))
    f = jax.lax.conv_general_dilated(
        h, params["conv1_w"], (1, 1), "SAME",
        dimension_numbers=("NHWC", "HWIO", "NHWC")) + params["conv1_b"]
    t = silu(time) @ params["lin_w"] + params["lin_b"]
    m = silu(_gn_ref(f + t[:, None, None, :], params["gn2_gamma"], params["gn2_beta"]))
    out = jax.lax.conv_general_dilated(
        m, params["conv2_w"], (1, 1), "SAME",
        dimension_numbers=("NHWC", "HWIO", "NHWC")) + params["conv2_b"]
    res = x if in_channels == out_channels else x @ params["res_w"] + params["res_b"]
    return jnp.transpose(out + res, (0, 3, 1, 2))


def _make_params(key, cin, cout, n_time):
    ks = jax.random.split(key, 8)
    return {
        "gn1_gamma": jnp.ones((cin,), jnp.float32),
        "gn1_beta":  jnp.zeros((cin,), jnp.float32),
        # conv weights stored as (kh, kw, Cin, Cout); linear as (in, out)
        "conv1_w": 0.05 * jax.random.normal(ks[0], (3, 3, cin, cout), jnp.float32),
        "conv1_b": 0.01 * jax.random.normal(ks[1], (cout,), jnp.float32),
        "lin_w":   0.02 * jax.random.normal(ks[2], (n_time, cout), jnp.float32),
        "lin_b":   0.01 * jax.random.normal(ks[3], (cout,), jnp.float32),
        "gn2_gamma": jnp.ones((cout,), jnp.float32),
        "gn2_beta":  jnp.zeros((cout,), jnp.float32),
        "conv2_w": 0.05 * jax.random.normal(ks[4], (3, 3, cout, cout), jnp.float32),
        "conv2_b": 0.01 * jax.random.normal(ks[5], (cout,), jnp.float32),
        "res_w":   0.05 * jax.random.normal(ks[6], (cin, cout), jnp.float32),
        "res_b":   0.01 * jax.random.normal(ks[7], (cout,), jnp.float32),
    }


if __name__ == "__main__":
    N, H, W, NT = 2, 16, 16, 1280
    key = jax.random.PRNGKey(0)
    k_feat, k_time, k_p1, k_p2 = jax.random.split(key, 4)
    time = jax.random.normal(k_time, (N, NT), jnp.float32)

    # case 1: in_channels != out_channels  (1x1 residual projection, fused into kernel B)
    Cin, Cout = 64, 128
    params = _make_params(k_p1, Cin, Cout, NT)
    feature = jax.random.normal(k_feat, (N, Cin, H, W), jnp.float32)   # NCHW
    out = jax.block_until_ready(unet_residual_block(feature, time, params, Cin, Cout))
    ref = _reference_block(feature, time, params, Cin, Cout)
    assert out.shape == (N, Cout, H, W)
    assert bool(jnp.all(jnp.isfinite(out)))
    err = float(jnp.max(jnp.abs(out - ref)))
    scale = float(jnp.max(jnp.abs(ref))) + 1.0
    assert err <= 0.05 * scale, f"projection-residual mismatch: {err} (scale {scale})"

    # case 2: in_channels == out_channels  (identity residual)
    C = 64
    params2 = _make_params(k_p2, C, C, NT)
    feature2 = jax.random.normal(k_feat, (N, C, H, W), jnp.float32)
    out2 = jax.block_until_ready(unet_residual_block(feature2, time, params2, C, C))
    ref2 = _reference_block(feature2, time, params2, C, C)
    assert out2.shape == (N, C, H, W)
    assert bool(jnp.all(jnp.isfinite(out2)))
    err2 = float(jnp.max(jnp.abs(out2 - ref2)))
    scale2 = float(jnp.max(jnp.abs(ref2))) + 1.0
    assert err2 <= 0.05 * scale2, f"identity-residual mismatch: {err2} (scale {scale2})"

    print("KERNEL_OK")
</pallas_src>

<mosaic_0001>
module attributes {stable_mosaic.version = 11 : i64} {
  func.func @_silu_linear_kernel(%arg0: i32, %arg1: memref<2x1280xf32, #tpu.memory_space<vmem>>, %arg2: memref<1280x128xbf16, #tpu.memory_space<vmem>>, %arg3: memref<1x128xf32, #tpu.memory_space<vmem>>, %arg4: memref<2x128xf32, #tpu.memory_space<vmem>>) attributes {dimension_semantics = [#tpu.dimension_semantics<parallel>], iteration_bounds = array<i64: 1>, scalar_prefetch = 0 : i64, scratch_operands = 0 : i64, tpu.core_type = #tpu.core_type<tc>, window_params = [{pipeline_mode = #tpu.pipeline_mode<synchronous>, transform_indices = @transform_0, window_bounds = array<i64: 2, 1280>}, {transform_indices = @transform_1, window_bounds = array<i64: 1280, 128>}, {transform_indices = @transform_2, window_bounds = array<i64: 1, 128>}, {transform_indices = @transform_3, window_bounds = array<i64: 2, 128>}]} {
    %c0 = arith.constant 0 : index
    %c0_0 = arith.constant 0 : index
    %0 = vector.load %arg1[%c0, %c0_0] : memref<2x1280xf32, #tpu.memory_space<vmem>>, vector<2x1280xf32>
    %1 = arith.negf %0 : vector<2x1280xf32>
    %2 = math.exp %1 : vector<2x1280xf32>
    %cst = arith.constant 1.000000e+00 : f32
    %3 = vector.broadcast %cst : f32 to vector<2x1280xf32>
    %4 = arith.addf %3, %2 : vector<2x1280xf32>
    %5 = arith.divf %3, %4 : vector<2x1280xf32>
    %6 = arith.mulf %0, %5 : vector<2x1280xf32>
    %7 = arith.truncf %6 : vector<2x1280xf32> to vector<2x1280xbf16>
    %c0_1 = arith.constant 0 : index
    %c0_2 = arith.constant 0 : index
    %8 = vector.load %arg2[%c0_1, %c0_2] : memref<1280x128xbf16, #tpu.memory_space<vmem>>, vector<1280x128xbf16>
    %cst_3 = arith.constant dense<0.000000e+00> : vector<2x128xf32>
    %9 = tpu.matmul %7, %8, %cst_3 {dimension_numbers = #tpu.dot_dimension_numbers<[1], [0], [0], [1], [0, 0, 1, 1], [], []>} : vector<2x1280xbf16>, vector<1280x128xbf16>, vector<2x128xf32> -> vector<2x128xf32>
    %c0_4 = arith.constant 0 : index
    %c0_5 = arith.constant 0 : index
    %10 = vector.load %arg3[%c0_4, %c0_5] : memref<1x128xf32, #tpu.memory_space<vmem>>, vector<1x128xf32>
    %11 = vector.broadcast %10 : vector<1x128xf32> to vector<2x128xf32>
    %12 = arith.addf %9, %11 : vector<2x128xf32>
    %c0_6 = arith.constant 0 : index
    %c0_7 = arith.constant 0 : index
    %13 = vector.load %arg4[%c0_6, %c0_7] : memref<2x128xf32, #tpu.memory_space<vmem>>, vector<2x128xf32>
    tpu.vector_store %arg4[%c0_6, %c0_7], %12 {strides = array<i32>} : memref<2x128xf32, #tpu.memory_space<vmem>>, vector<2x128xf32>,
    return
  }
  func.func @transform_0(%arg0: i32) -> (i32, i32) {
    %c0_i32 = arith.constant 0 : i32
    %c0_i32_0 = arith.constant 0 : i32
    %c0_i32_1 = arith.constant 0 : i32
    return %c0_i32, %c0_i32_0 : i32, i32
  }
  func.func @transform_1(%arg0: i32) -> (i32, i32) {
    %c0_i32 = arith.constant 0 : i32
    %c0_i32_0 = arith.constant 0 : i32
    return %c0_i32, %arg0 : i32, i32
  }
  func.func @transform_2(%arg0: i32) -> (i32, i32) {
    %c0_i32 = arith.constant 0 : i32
    %c0_i32_0 = arith.constant 0 : i32
    return %c0_i32, %arg0 : i32, i32
  }
  func.func @transform_3(%arg0: i32) -> (i32, i32) {
    %c0_i32 = arith.constant 0 : i32
    %c0_i32_0 = arith.constant 0 : i32
    return %c0_i32, %arg0 : i32, i32
  }
}

</mosaic_0001>

<bundles_post_ra>
// kernel: tpu_custom_call.1
= control target key start
LH: loop header
LB: loop body
LE: loop exit
PB: predicated region body
PF: predicated region fallthrough
CT: control target
= control target key end

     0   :  { %8 = vsyncpa [#allocation3], 0  ;;  %s1406_s0 = inlined_call_operand.hbm [shape: f32[2,1280], index: 0, kind: input, shape index: {}]   ;;  %s1407_s1 = inlined_call_operand.hbm [shape: bf16[1280,128], index: 1, kind: input, shape index: {}]   ;;  %s1408_s2 = inlined_call_operand.vmem [shape: f32[1,128], index: 2, kind: input, shape index: {}]   ;;  %s1409_s3 = inlined_call_operand.hbm [shape: f32[2,128], index: 3, kind: output, shape index: {}]  }
   0x1   :  { %9 = vsyncpa [#allocation6], 0 }
   0x2   :  { %10 = vsyncpa [#allocation4], 0  ;;  %s1353_s12 = smov [#allocation2]   ;;  %s1354_s14 = smov [#allocation5]  }
   0x3   :  { %s17_s13 = sshll.u32 %s1353_s12, 4  ;;  %s26_s15 = sshll.u32 %s1354_s14, 4  ;;  %s18_s13 = int_to_ptr.vmem [resolvable:$true] %s17_s13  ;;  %s27_s15 = int_to_ptr.vmem [resolvable:$true] %s26_s15 }
   0x4   :  { %s1295_s16 = scalar_lea.vmem %s18_s13, 320  ;;  %p1300_p1 = scmp.lt.s32.totalorder %s18_s13, %s18_s13 }
   0x5   :  { %p1296_p0 = scmp.ne.s32.totalorder %s18_s13, %s1295_s16  ;;  %p1301_p2 = scmp.lt.s32.totalorder %s1295_s16, %s1295_s16 }
   0x7   :  { %p1302_p3 = por %p1301_p2, %p1300_p1 }
   0x9   :  { %p1303_p4 = pnand %p1302_p3, %p1296_p0 }
   0xb   :  { %1306 = shalt.err (!%p1303_p4)
}
   0xc   :  { %20 = dma.hbm_to_vmem [thread:$0]  %s1406_s0, 320, %s18_s13, [#allocation3]  }
   0xd   :  { %s1315_s19 = scalar_lea.vmem %s27_s15, 10240  ;;  %p1320_p6 = scmp.lt.s32.totalorder %s27_s15, %s27_s15 }
   0xe   :  { %p1316_p5 = scmp.ne.s32.totalorder %s27_s15, %s1315_s19  ;;  %p1321_p7 = scmp.lt.s32.totalorder %s1315_s19, %s1315_s19 }
  0x10   :  { %p1322_p8 = por %p1321_p7, %p1320_p6 }
  0x12   :  { %p1323_p9 = pnand %p1322_p8, %p1316_p5 }
  0x14   :  { %1326 = shalt.err (!%p1323_p9)
}
  0x15   :  { %s1355_s20 = smov 64   ;;  %s1356_s21 = smov 4  }
  0x16   :  { %32 = dma.hbm_to_vmem [thread:$0]  %s1407_s1, 10240, %s27_s15, [#allocation6], %s1355_s20, %s1355_s20, %s1356_s21  }
  0x17   :  { %1347 = dma.done.wait [#allocation3], 320  }
  0x18   :  { %1348 = vsyncadd [#allocation3], 4294966976 }
  0x19   :  { %1349 = dma.done.wait [#allocation6], 10240  }
  0x1a   :  { %1350 = vsyncadd [#allocation6], 4294957056  ;;  %v1195_v0 = vld [vmem:[#allocation5 + $0x78] sm:$0xff]   ;;  %v1199_v4 = vld [vmem:[#allocation5 + $0x70] sm:$0xff]   ;;  %v1357_v38 = vmov 1983009808   ;;  %v73_v40 = vlaneseq }
  0x1b   :  { %v1196_v1 = vld [vmem:[#allocation5 + $0x38] sm:$0xff]   ;;  %1079 = vmatprep.subr.bf16.mxu0 %v1195_v0  ;;  %v1200_v5 = vld [vmem:[#allocation5 + $0x30] sm:$0xff]   ;;  %v1203_v8 = vld [vmem:[#allocation5 + $0x68] sm:$0xff]   ;;  %v71_v39 = vunpack.c.l.s4 %v1357_v38  ;;  %s1358_s24 = smov [#allocation7]  }
  0x1c   :  { %v1197_v2 = vld [vmem:[#allocation5 + $0xf8] sm:$0xff]   ;;  %1080 = vmatpush3.bf16.msra.mxu0 %v1196_v1  ;;  %v1201_v6 = vld [vmem:[#allocation5 + $0xf0] sm:$0xff]   ;;  %v1204_v9 = vld [vmem:[#allocation5 + $0x28] sm:$0xff]   ;;  %v74_v42 = vshrl.u32 %v73_v40, 7  ;;  %s985_s25 = sshll.u32 %s1358_s24, 4  ;;  %s986_s25 = int_to_ptr.vmem [resolvable:$true] %s985_s25 }
  0x1d   :  { %v1198_v3 = vld [vmem:[#allocation5 + $0xb8] sm:$0xff]   ;;  %1101 = vmatprep.subr.bf16.mxu1 %v1197_v2  ;;  %1081 = vmatprep.subr.bf16.mxu0 %v1199_v4  ;;  %v1202_v7 = vld [vmem:[#allocation5 + $0xb0] sm:$0xff]   ;;  %v1205_v10 = vld [vmem:[#allocation5 + $0xe8] sm:$0xff]   ;;  %v72_v41 = vunpack.c.0.s8 %v71_v39  ;;  %s1327_s26 = scalar_lea.vmem %s986_s25, 32  ;;  %p1332_p11 = scmp.lt.s32.totalorder %s986_s25, %s986_s25 }
  0x1e   :  { %1102 = vmatpush3.bf16.msra.mxu1 %v1198_v3  ;;  %v1206_v11 = vld [vmem:[#allocation5 + $0xa8] sm:$0xff]   ;;  %v1207_v12 = vld [vmem:[#allocation5 + $0x60] sm:$0xff]   ;;  %v1211_v16 = vld [vmem:[#allocation5 + $0x58] sm:$0xff]   ;;  %p1328_p10 = scmp.ne.s32.totalorder %s986_s25, %s1327_s26  ;;  %p1333_p12 = scmp.lt.s32.totalorder %s1327_s26, %s1327_s26 }
  0x1f   :  { %1103 = vmatprep.subr.bf16.mxu1 %v1201_v6  ;;  %v1208_v13 = vld [vmem:[#allocation5 + $0x20] sm:$0xff]   ;;  %v1212_v17 = vld [vmem:[#allocation5 + $0x18] sm:$0xff]   ;;  %v1215_v20 = vld [vmem:[#allocation5 + $0x50] sm:$0xff]   ;;  %v1385_v43 = vsub.s32 %v72_v41, %v74_v42 }
  0x20   :  { %1082 = vmatpush3.bf16.msra.mxu0 %v1200_v5  ;;  %v1209_v14 = vld [vmem:[#allocation5 + $0xe0] sm:$0xff]   ;;  %v1213_v18 = vld [vmem:[#allocation5 + $0xd8] sm:$0xff]   ;;  %v1216_v21 = vld [vmem:[#allocation5 + $0x10] sm:$0xff]   ;;  %p1334_p13 = por %p1333_p12, %p1332_p11 }
  0x21   :  { %1083 = vmatprep.subr.bf16.mxu0 %v1203_v8  ;;  %v1210_v15 = vld [vmem:[#allocation5 + $0xa0] sm:$0xff]   ;;  %v1214_v19 = vld [vmem:[#allocation5 + $0x98] sm:$0xff]   ;;  %v1217_v22 = vld [vmem:[#allocation5 + $0xd0] sm:$0xff]  }
  0x22   :  { %1104 = vmatpush3.bf16.msra.mxu1 %v1202_v7  ;;  %v1218_v23 = vld [vmem:[#allocation5 + $0x90] sm:$0xff]   ;;  %v1219_v24 = vld [vmem:[#allocation5 + $0x48] sm:$0xff]   ;;  %v1223_v28 = vld [vmem:[#allocation5 + $0x40] sm:$0xff]   ;;  %p1335_p0 = pnand %p1334_p13, %p1328_p10 }
  0x23   :  { %1105 = vmatprep.subr.bf16.mxu1 %v1205_v10  ;;  %v1220_v25 = vld [vmem:[#allocation5 + $0x8] sm:$0xff]   ;;  %v1224_v29 = vld [vmem:[#allocation5] sm:$0xff]   ;;  %v1227_v34 = vld [vmem:[#allocation5 + $0x178] sm:$0xff]  }
  0x24   :  { %1084 = vmatpush3.bf16.msra.mxu0 %v1204_v9  ;;  %v1221_v26 = vld [vmem:[#allocation5 + $0xc8] sm:$0xff]   ;;  %v1225_v30 = vld [vmem:[#allocation5 + $0xc0] sm:$0xff]   ;;  %v1229_v35 = vld [vmem:[#allocation5 + $0x1f8] sm:$0xff]  }
  0x25   :  { %1085 = vmatprep.subr.bf16.mxu0 %v1207_v12  ;;  %v1222_v27 = vld [vmem:[#allocation5 + $0x88] sm:$0xff]   ;;  %v1226_v31 = vld [vmem:[#allocation5 + $0x80] sm:$0xff]   ;;  %v1387_v44 = vld [vmem:[#allocation2 + $0x8] sm:$0xff] }
  0x26   :  { %1106 = vmatpush3.bf16.msra.mxu1 %v1206_v11  ;;  %v42_v32 = vld [vmem:[#allocation2] sm:$0xff]  ;;  %v996_v46 = vmul.f32 -1.442695, %v1387_v44  ;;  %v1228_v54 = vld [vmem:[#allocation5 + $0x138] sm:$0xff]   ;;  %v1239_v3 = vld [vmem:[#allocation5 + $0x160] sm:$0xff]  }
  0x27   :  { %1107 = vmatprep.subr.bf16.mxu1 %v1209_v14  ;;  %v995_v33 = vmul.f32 -1.442695, %v42_v32  ;;  %v1231_v57 = vld [vmem:[#allocation5 + $0x170] sm:$0xff]   ;;  %v1230_v59 = vld [vmem:[#allocation5 + $0x1b8] sm:$0xff]   ;;  %v1235_v62 = vld [vmem:[#allocation5 + $0x168] sm:$0xff]  }
  0x28   :  { %1086 = vmatpush3.bf16.msra.mxu0 %v1208_v13  ;;  %v1233_v60 = vld [vmem:[#allocation5 + $0x1f0] sm:$0xff]   ;;  %v1237_v0 = vld [vmem:[#allocation5 + $0x1e8] sm:$0xff]   ;;  %v1392_v5 = vld [vmem:[#allocation2 + $0x10] sm:$0xf] }
  0x29   :  { %1087 = vmatprep.subr.bf16.mxu0 %v1211_v16  ;;  %1275 = vpow2.f32 %v995_v33  ;;  %v1232_v61 = vld [vmem:[#allocation5 + $0x130] sm:$0xff]   ;;  %v1236_v2 = vld [vmem:[#allocation5 + $0x128] sm:$0xff]   ;;  %v997_v7 = vmul.f32 -1.442695, %v1392_v5  ;;  %v1241_v8 = vld [vmem:[#allocation5 + $0x1e0] sm:$0xff]  }
  0x2a   :  { %1108 = vmatpush3.bf16.msra.mxu1 %v1210_v15  ;;  %v1234_v63 = vld [vmem:[#allocation5 + $0x1b0] sm:$0xff]   ;;  %v1238_v6 = vld [vmem:[#allocation5 + $0x1a8] sm:$0xff]   ;;  %v1240_v9 = vld [vmem:[#allocation5 + $0x120] sm:$0xff]  }
  0x2b   :  { %1109 = vmatprep.subr.bf16.mxu1 %v1213_v18  ;;  %v1243_v10 = vld [vmem:[#allocation5 + $0x158] sm:$0xff]   ;;  %v1242_v11 = vld [vmem:[#allocation5 + $0x1a0] sm:$0xff]   ;;  %v1247_v14 = vld [vmem:[#allocation5 + $0x150] sm:$0xff]  }
  0x2c   :  { %1088 = vmatpush3.bf16.msra.mxu0 %v1212_v17  ;;  %v1245_v12 = vld [vmem:[#allocation5 + $0x1d8] sm:$0xff]   ;;  %v1249_v16 = vld [vmem:[#allocation5 + $0x1d0] sm:$0xff]   ;;  %v1251_v18 = vld [vmem:[#allocation5 + $0x148] sm:$0xff]  }
  0x2d   :  { %1089 = vmatprep.subr.bf16.mxu0 %v1215_v20  ;;  %v1244_v13 = vld [vmem:[#allocation5 + $0x118] sm:$0xff]   ;;  %v1248_v17 = vld [vmem:[#allocation5 + $0x110] sm:$0xff]   ;;  %v1253_v20 = vld [vmem:[#allocation5 + $0x1c8] sm:$0xff]  }
  0x2e   :  { %1110 = vmatpush3.bf16.msra.mxu1 %v1214_v19  ;;  %v1246_v15 = vld [vmem:[#allocation5 + $0x198] sm:$0xff]   ;;  %v1250_v19 = vld [vmem:[#allocation5 + $0x190] sm:$0xff]  }
  0x2f   :  { %1111 = vmatprep.subr.bf16.mxu1 %v1217_v22  ;;  %v1252_v22 = vld [vmem:[#allocation5 + $0x108] sm:$0xff]   ;;  %v1259_v33 = vld [vmem:[#allocation5 + $0x278] sm:$0xff]   ;;  %v1261_v42 = vld [vmem:[#allocation5 + $0x270] sm:$0xff]  }
  0x30   :  { %1090 = vmatpush3.bf16.msra.mxu0 %v1216_v21  ;;  %v1260_v39 = vld [vmem:[#allocation5 + $0x238] sm:$0xff]  }
  0x31   :  { %1091 = vmatprep.subr.bf16.mxu0 %v1219_v24  ;;  %v1255_v24 = vld [vmem:[#allocation5 + $0x140] sm:$0xff]  }
  0x32   :  { %1112 = vmatpush3.bf16.msra.mxu1 %v1218_v23 }
  0x33   :  { %1113 = vmatprep.subr.bf16.mxu1 %v1221_v26  ;;  %v1254_v26 = vld [vmem:[#allocation5 + $0x188] sm:$0xff]  }
  0x34   :  { %1092 = vmatpush3.bf16.msra.mxu0 %v1220_v25 }
  0x35   :  { %1093 = vmatprep.subr.bf16.mxu0 %v1223_v28  ;;  %v1257_v28 = vld [vmem:[#allocation5 + $0x1c0] sm:$0xff]  }
  0x36   :  { %1114 = vmatpush3.bf16.msra.mxu1 %v1222_v27  ;;  %v1276_v36 = vpop.eup %1275 }
  0x37   :  { %1115 = vmatprep.subr.bf16.mxu1 %v1225_v30  ;;  %v54_v37 = vadd.f32 1.0, %v1276_v36 }
  0x38   :  { %1094 = vmatpush3.bf16.msra.mxu0 %v1224_v29 }
  0x39   :  { %1123 = vmatprep.subr.bf16.mxu0 %v1227_v34  ;;  %1277 = vrcp.f32 %v54_v37 }
  0x3a   :  { %1116 = vmatpush3.bf16.msra.mxu1 %v1226_v31  ;;  %1279 = vpow2.f32 %v996_v46  ;;  %v1256_v31 = vld [vmem:[#allocation5 + $0x100] sm:$0xff]   ;;  %v1264_v46 = vld [vmem:[#allocation5 + $0x228] sm:$0xff]  }
  0x3b   :  { %1145 = vmatprep.subr.bf16.mxu1 %v1229_v35  ;;  %v1258_v35 = vld [vmem:[#allocation5 + $0x180] sm:$0xff]  }
  0x46   :  { %v1278_v45 = vpop.eup %1277 }
  0x47   :  { %v63_v47 = vmul.f32 %v1278_v45, %v42_v32  ;;  %v1280_v1 = vpop.eup %1279  ;;  %v1263_v45 = vld [vmem:[#allocation5 + $0x268] sm:$0xff]  }
  0x48   :  { %v55_v4 = vadd.f32 1.0, %v1280_v1 }
  0x49   :  { %v76_v48 = vrot.slane %v63_v47, %v1385_v43  ;;  %v69_v49 = vcombine.high %v63_v47, %v63_v47 }
  0x4a   :  { %1281 = vrcp.f32 %v55_v4 }
  0x4b   :  { %v84_v50 = vcombine.high %v76_v48, %v76_v48  ;;  %v83_v51 = vrot.slane %v69_v49, %v1385_v43  ;;  %v121_v52 = vpack.c.bf16 %v76_v48, %v76_v48  ;;  %1283 = vpow2.f32 %v997_v7  ;;  %v1265_v48 = vld [vmem:[#allocation5 + $0x260] sm:$0xff]  }
  0x4d   :  { %v122_v53 = vpack.c.bf16 %v84_v50, %v84_v50  ;;  %v85_v55 = vcombine.high %v83_v51, %v83_v51  ;;  %v123_v56 = vpack.c.bf16 %v83_v51, %v83_v51  ;;  %v1266_v50 = vld [vmem:[#allocation5 + $0x220] sm:$0xff]  }
  0x4f   :  { %810 = vmatprep.mubr.bf16.mxu0 %v122_v53  ;;  %v124_v58 = vpack.c.bf16 %v85_v55, %v85_v55 }
  0x50   :  { %811 = vmatmul.mubr.bf16.vlgmr.msra.gmra.mxu0 %v121_v52  ;;  %v1267_v52 = vld [vmem:[#allocation5 + $0x258] sm:$0xff]  }
  0x51   :  { %1124 = vmatpush3.bf16.msra.mxu0 %v1228_v54  ;;  %850 = vmatprep.mubr.bf16.mxu1 %v124_v58  ;;  %v1268_v54 = vld [vmem:[#allocation5 + $0x218] sm:$0xff]   ;;  %v1271_v58 = vld [vmem:[#allocation5 + $0x248] sm:$0xff]  }
  0x52   :  { %851 = vmatmul.mubr.bf16.vlgmr.msra.gmra.mxu1 %v123_v56  ;;  %1125 = vmatprep.subr.bf16.mxu0 %v1231_v57  ;;  %v1269_v56 = vld [vmem:[#allocation5 + $0x250] sm:$0xff]  }
  0x53   :  { %1146 = vmatpush3.bf16.msra.mxu1 %v1230_v59  ;;  %v1270_v57 = vld [vmem:[#allocation5 + $0x210] sm:$0xff]   ;;  %v1272_v59 = vld [vmem:[#allocation5 + $0x208] sm:$0xff]  }
  0x54   :  { %1147 = vmatprep.subr.bf16.mxu1 %v1233_v60  ;;  %v1273_v60 = vld [vmem:[#allocation5 + $0x240] sm:$0xff]  }
  0x55   :  { %1126 = vmatpush3.bf16.msra.mxu0 %v1232_v61  ;;  %v1274_v61 = vld [vmem:[#allocation5 + $0x200] sm:$0xff]  }
  0x56   :  { %1127 = vmatprep.subr.bf16.mxu0 %v1235_v62 }
  0x57   :  { %1148 = vmatpush3.bf16.msra.mxu1 %v1234_v63  ;;  %v1282_v21 = vpop.eup %1281 }
  0x58   :  { %1149 = vmatprep.subr.bf16.mxu1 %v1237_v0  ;;  %v1284_v23 = vpop.eup %1283  ;;  %v64_v25 = vmul.f32 %v1282_v21, %v1387_v44  ;;  %v1262_v44 = vld [vmem:[#allocation5 + $0x230] sm:$0xff]  }
  0x59   :  { %1128 = vmatpush3.bf16.msra.mxu0 %v1236_v2  ;;  %v56_v27 = vadd.f32 1.0, %v1284_v23 }
  0x5a   :  { %1129 = vmatprep.subr.bf16.mxu0 %v1239_v3  ;;  %v93_v29 = vrot.slane %v64_v25, %v1385_v43  ;;  %v86_v30 = vcombine.high %v64_v25, %v64_v25 }
  0x5b   :  { %1150 = vmatpush3.bf16.msra.mxu1 %v1238_v6  ;;  %1285 = vrcp.f32 %v56_v27 }
  0x5c   :  { %1151 = vmatprep.subr.bf16.mxu1 %v1241_v8  ;;  %v101_v32 = vcombine.high %v93_v29, %v93_v29  ;;  %v100_v34 = vrot.slane %v86_v30, %v1385_v43  ;;  %v125_v37 = vpack.c.bf16 %v93_v29, %v93_v29 }
  0x5d   :  { %1130 = vmatpush3.bf16.msra.mxu0 %v1240_v9 }
  0x5e   :  { %1131 = vmatprep.subr.bf16.mxu0 %v1243_v10  ;;  %v126_v36 = vpack.c.bf16 %v101_v32, %v101_v32  ;;  %v102_v38 = vcombine.high %v100_v34, %v100_v34  ;;  %v127_v41 = vpack.c.bf16 %v100_v34, %v100_v34 }
  0x5f   :  { %1152 = vmatpush3.bf16.msra.mxu1 %v1242_v11 }
  0x60   :  { %1153 = vmatprep.subr.bf16.mxu1 %v1245_v12  ;;  %890 = vmatprep.mubr.bf16.mxu0 %v126_v36  ;;  %v128_v40 = vpack.c.bf16 %v102_v38, %v102_v38 }
  0x61   :  { %1132 = vmatpush3.bf16.msra.mxu0 %v1244_v13 }
  0x62   :  { %1133 = vmatprep.subr.bf16.mxu0 %v1247_v14  ;;  %930 = vmatprep.mubr.bf16.mxu1 %v128_v40 }
  0x63   :  { %1154 = vmatpush3.bf16.msra.mxu1 %v1246_v15  ;;  %v998_v15 = vld [vmem:[%s1408_s2] ss:$0 sm:$0xff] }
  0x64   :  { %1155 = vmatprep.subr.bf16.mxu1 %v1249_v16 }
  0x65   :  { %1134 = vmatpush3.bf16.msra.mxu0 %v1248_v17 }
  0x66   :  { %1135 = vmatprep.subr.bf16.mxu0 %v1251_v18 }
  0x67   :  { %1156 = vmatpush3.bf16.msra.mxu1 %v1250_v19 }
  0x68   :  { %1157 = vmatprep.subr.bf16.mxu1 %v1253_v20  ;;  %v1286_v47 = vpop.eup %1285 }
  0x69   :  { %1136 = vmatpush3.bf16.msra.mxu0 %v1252_v22  ;;  %v65_v49 = vmul.f32 %v1286_v47, %v1392_v5 }
  0x6a   :  { %1137 = vmatprep.subr.bf16.mxu0 %v1255_v24 }
  0x6b   :  { %1158 = vmatpush3.bf16.msra.mxu1 %v1254_v26  ;;  %v109_v51 = vrot.slane %v65_v49, %v1385_v43 }
  0x6c   :  { %1159 = vmatprep.subr.bf16.mxu1 %v1257_v28 }
  0x6d   :  { %1138 = vmatpush3.bf16.msra.mxu0 %v1256_v31  ;;  %v110_v53 = vcombine.high %v109_v51, %v109_v51  ;;  %v129_v43 = vpack.c.bf16 %v109_v51, %v109_v51 }
  0x6e   :  { %1167 = vmatprep.subr.bf16.mxu0 %v1259_v33 }
  0x6f   :  { %1160 = vmatpush3.bf16.msra.mxu1 %v1258_v35  ;;  %v130_v55 = vpack.c.bf16 %v110_v53, %v110_v53 }
  0x70   :  { %891 = vmatmul.mubr.bf16.vlgmr.msra.gmra.mxu0 %v125_v37 }
  0x71   :  { %1168 = vmatpush3.bf16.msra.mxu0 %v1260_v39  ;;  %970 = vmatprep.mubr.bf16.mxu0 %v130_v55 }
  0x72   :  { %931 = vmatmul.mubr.bf16.vlgmr.msra.gmra.mxu1 %v127_v41  ;;  %1169 = vmatprep.subr.bf16.mxu0 %v1261_v42 }
  0x75   :  { %1170 = vmatpush3.bf16.msra.mxu0 %v1262_v44 }
  0x76   :  { %1171 = vmatprep.subr.bf16.mxu0 %v1263_v45 }
  0x79   :  { %1172 = vmatpush3.bf16.msra.mxu0 %v1264_v46 }
  0x7a   :  { %1173 = vmatprep.subr.bf16.mxu0 %v1265_v48 }
  0x7d   :  { %1174 = vmatpush3.bf16.msra.mxu0 %v1266_v50 }
  0x7e   :  { %1175 = vmatprep.subr.bf16.mxu0 %v1267_v52 }
  0x81   :  { %1176 = vmatpush3.bf16.msra.mxu0 %v1268_v54 }
  0x82   :  { %1177 = vmatprep.subr.bf16.mxu0 %v1269_v56 }
  0x85   :  { %1178 = vmatpush3.bf16.msra.mxu0 %v1270_v57 }
  0x86   :  { %1179 = vmatprep.subr.bf16.mxu0 %v1271_v58 }
  0x89   :  { %1180 = vmatpush3.bf16.msra.mxu0 %v1272_v59 }
  0x8a   :  { %1181 = vmatprep.subr.bf16.mxu0 %v1273_v60 }
  0x8d   :  { %1182 = vmatpush3.bf16.msra.mxu0 %v1274_v61 }
  0x90   :  { %971 = vmatmul.mubr.bf16.vlgmr.msra.gmra.mxu0 %v129_v43 }
 0x110   :  { %v1095_v62 = vpop.f32.mrf.mxu0 }
 0x112   :  { %v1096_v63 = vpop.f32.mrf.mxu0  ;;  %v1117_v0 = vpop.f32.mrf.mxu1 }
 0x113   :  { %v1097_v14 = vadd.f32 %v1096_v63, %v1095_v62 }
 0x114   :  { %v1098_v1 = vpop.f32.mrf.mxu0  ;;  %v1118_v2 = vpop.f32.mrf.mxu1 }
 0x115   :  { %v813_v16 = vadd.f32 %v1097_v14, %v998_v15  ;;  %v1119_v17 = vadd.f32 %v1118_v2, %v1117_v0 }
 0x116   :  { %v1099_v3 = vpop.f32.mrf.mxu0  ;;  %v1120_v4 = vpop.f32.mrf.mxu1 }
 0x117   :  { %v853_v19 = vadd.f32 %v1119_v17, %v813_v16 }
 0x118   :  { %v1121_v5 = vpop.f32.mrf.mxu1 }
 0x130   :  { %v1139_v6 = vpop.f32.mrf.mxu0 }
 0x132   :  { %v1140_v7 = vpop.f32.mrf.mxu0  ;;  %v1161_v8 = vpop.f32.mrf.mxu1 }
 0x133   :  { %v1141_v18 = vadd.f32 %v1140_v7, %v1139_v6 }
 0x134   :  { %v1142_v9 = vpop.f32.mrf.mxu0  ;;  %v1162_v10 = vpop.f32.mrf.mxu1 }
 0x135   :  { %v893_v20 = vadd.f32 %v1141_v18, %v853_v19  ;;  %v1163_v21 = vadd.f32 %v1162_v10, %v1161_v8 }
 0x136   :  { %v1143_v11 = vpop.f32.mrf.mxu0  ;;  %v1164_v12 = vpop.f32.mrf.mxu1 }
 0x137   :  { %v933_v24 = vadd.f32 %v1163_v21, %v893_v20 }
 0x138   :  { %v1165_v13 = vpop.f32.mrf.mxu1 }
 0x150   :  { %v1183_v22 = vpop.f32.mrf.mxu0 }
 0x152   :  { %v1184_v23 = vpop.f32.mrf.mxu0 }
 0x153   :  { %v1185_v25 = vadd.f32 %v1184_v23, %v1183_v22 }
 0x154   :  { %v1186_v26 = vpop.f32.mrf.mxu0 }
 0x155   :  { %v973_v27 = vadd.f32 %v1185_v25, %v933_v24 }
 0x156   :  { %v1187_v28 = vpop.f32.mrf.mxu0 }
 0x157   :  { %978 = vst [vmem:[#allocation7] sm:$0x3] %v973_v27 }
 0x158   :  { %1338 = shalt.err (!%p1335_p0)
}
 0x159   :  { %988 = dma.vmem_to_hbm [thread:$0]  %s986_s25, 32, %s1409_s3, [#allocation4]  }
 0x15a   :  { %1351 = dma.done.wait [#allocation4], 32  }
 0x15b   :  { %1352 = vsyncadd [#allocation4], 4294967264 }
 0x15c   :  { %992 = vsyncpa [#allocation3], 1 }
 0x15d   :  { %993 = vsyncpa [#allocation6], 1 }
 0x15e   :  { %994 = vsyncpa [#allocation4], 1 }

</bundles_post_ra>
